<compile_context>
chip_gen: v5e
topology: v5e:2x2
jax: 0.10.0
libtpu: 0.0.40
codegen_flags: <defaults>
</compile_context>

<pallas_src>
import math
from functools import partial

import jax
import jax.numpy as jnp
from jax.experimental import pallas as pl
from jax.experimental.pallas import tpu as pltpu


# ----------------------------------------------------------------------------- utilities
def _round_up(x, m):
    return ((x + m - 1) // m) * m


# Blocks at these sizes use well under 8 MiB; the caps only have to stay below v7x's 64 MiB
# physical VMEM (v5e/v6e have 128 MiB).  Re-derive if block sizes grow.
_MM_VMEM_LIMIT = 48 * 1024 * 1024
_MISC_VMEM_LIMIT = 32 * 1024 * 1024


# ----------------------------------------------------------------------------- Pallas kernels
def _mm_kernel(a_ref, b_ref, s_ref, c_ref, o_ref, *, activation):
    """bf16 matmul (f32 accumulate) + per-channel affine (folded BN / bias) + activation."""
    acc = jnp.dot(a_ref[...], b_ref[...], preferred_element_type=jnp.float32)
    acc = acc * s_ref[...] + c_ref[...]
    if activation == "relu":
        acc = jnp.maximum(acc, 0.0)
    elif activation == "sigmoid":
        acc = jax.nn.sigmoid(acc)
    o_ref[...] = acc.astype(o_ref.dtype)


def _mm_res_kernel(a_ref, b_ref, s_ref, c_ref, r_ref, o_ref, *, activation):
    """Same as _mm_kernel but with a fused (bf16) residual add before the activation."""
    acc = jnp.dot(a_ref[...], b_ref[...], preferred_element_type=jnp.float32)
    acc = acc * s_ref[...] + c_ref[...] + r_ref[...].astype(jnp.float32)
    if activation == "relu":
        acc = jnp.maximum(acc, 0.0)
    elif activation == "sigmoid":
        acc = jax.nn.sigmoid(acc)
    o_ref[...] = acc.astype(o_ref.dtype)


def matmul_bn_act(a, b, scale, shift, *, act=None, residual=None, out_dtype=jnp.bfloat16):
    """a: (M, K); b: (Kp, Np) bf16 pre-padded; scale/shift: (1, Np) f32.

    Tiles M (TM mult of 16, bf16 sublane packing) and N (TN=256 where the padded Cout allows,
    both grid axes "parallel" so v7x megacore gets work even for a single M tile).
    Returns the padded (Mp, Np) result in out_dtype; callers slice to the real shape."""
    M, K = a.shape
    Kp, Np = b.shape
    TM = min(256, _round_up(M, 16))
    Mp = _round_up(M, TM)
    TN = 256 if (Np % 256 == 0 and Np > 256) else Np
    a = a.astype(jnp.bfloat16)
    if (Mp, Kp) != (M, K):
        a = jnp.pad(a, ((0, Mp - M), (0, Kp - K)))

    in_specs = [
        pl.BlockSpec((TM, Kp), lambda i, j: (i, 0)),
        pl.BlockSpec((Kp, TN), lambda i, j: (0, j)),
        pl.BlockSpec((1, TN), lambda i, j: (0, j)),
        pl.BlockSpec((1, TN), lambda i, j: (0, j)),
    ]
    args = [a, b, scale, shift]
    if residual is not None:
        r = residual.astype(jnp.bfloat16)
        rM, rN = r.shape
        if (Mp, Np) != (rM, rN):
            r = jnp.pad(r, ((0, Mp - rM), (0, Np - rN)))
        in_specs.append(pl.BlockSpec((TM, TN), lambda i, j: (i, j)))
        args.append(r)
        kern = partial(_mm_res_kernel, activation=act)
    else:
        kern = partial(_mm_kernel, activation=act)

    return pl.pallas_call(
        kern,
        out_shape=jax.ShapeDtypeStruct((Mp, Np), out_dtype),
        grid=(Mp // TM, Np // TN),
        in_specs=in_specs,
        out_specs=pl.BlockSpec((TM, TN), lambda i, j: (i, j)),
        compiler_params=pltpu.CompilerParams(
            dimension_semantics=("parallel", "parallel"),
            vmem_limit_bytes=_MM_VMEM_LIMIT),
    )(*args)


def _gru_bidir_kernel(gx_ref, whh_ref, bhh_ref, out_ref, h_ref, *, hidden, tt):
    """Both GRU directions, TT timesteps per grid step.

    NOTE (correctness): the direction axis must stay first and "parallel" (per-core scratch on
    megacore) and the time axis must stay "arbitrary"/innermost so it iterates sequentially per
    direction; h_ref is re-zeroed whenever the time index restarts, which is exactly when the
    direction changes on a single-core chip.  Do not reorder the grid axes."""
    d = pl.program_id(0)
    H = hidden

    @pl.when(pl.program_id(1) == 0)
    def _():
        h_ref[...] = jnp.zeros_like(h_ref)

    whh = whh_ref[0]          # (H, 3H) bf16, resident across the whole scan
    bhh = bhh_ref[0]          # (1, 3H) f32

    def step(s, carry):
        idx = jnp.where(d == 0, s, tt - 1 - s)   # backward dir walks the block in reverse
        h = h_ref[...]
        gh = jnp.dot(h.astype(jnp.bfloat16), whh,
                     preferred_element_type=jnp.float32) + bhh
        gx = gx_ref[idx]                          # (Bp, 3H) f32
        r = jax.nn.sigmoid(gx[:, :H] + gh[:, :H])
        z = jax.nn.sigmoid(gx[:, H:2 * H] + gh[:, H:2 * H])
        n = jnp.tanh(gx[:, 2 * H:] + r * gh[:, 2 * H:])
        h_new = (1.0 - z) * n + z * h
        h_ref[...] = h_new
        out_ref[idx] = h_new
        return carry

    jax.lax.fori_loop(0, tt, step, 0, unroll=True)


def _pick_tt(T):
    for cand in (16, 8, 4, 2):
        if T % cand == 0:
            return cand
    return 1


def _gru_bidir_scan(gx, w_hh, b_hh):
    # gx: (T, Bp, 6H) f32 (fwd gates in lanes [:3H], bwd gates in [3H:]); w_hh: (2, H, 3H) bf16.
    T, Bp, sixH = gx.shape
    H = sixH // 6
    tt = _pick_tt(T)
    nT = T // tt

    def io_map(d, t):
        # direction 0 walks time-blocks forward; direction 1 walks them in reverse and (with the
        # reversed in-block walk) writes every hidden state back to its forward-order slot, so no
        # flip is needed afterwards.  The last block-axis index d selects the direction's lane
        # half (3H of gx, H of the output).
        return (t + d * (nT - 1 - 2 * t), 0, d)

    return pl.pallas_call(
        partial(_gru_bidir_kernel, hidden=H, tt=tt),
        out_shape=jax.ShapeDtypeStruct((T, Bp, 2 * H), jnp.float32),
        grid=(2, nT),
        in_specs=[
            pl.BlockSpec((tt, Bp, 3 * H), io_map),
            pl.BlockSpec((1, H, 3 * H), lambda d, t: (d, 0, 0)),
            pl.BlockSpec((1, 1, 3 * H), lambda d, t: (d, 0, 0)),
        ],
        out_specs=pl.BlockSpec((tt, Bp, H), io_map),
        scratch_shapes=[pltpu.VMEM((Bp, H), jnp.float32)],
        compiler_params=pltpu.CompilerParams(
            dimension_semantics=("parallel", "arbitrary"),
            vmem_limit_bytes=_MM_VMEM_LIMIT),
    )(gx, w_hh, b_hh)


def _se_kernel(x_ref, r_ref, w1_ref, b1_ref, w2_ref, b2_ref, o_ref):
    """Fused SE block: max-pool(H,W) + fc1-relu + fc2-sigmoid + channel scale + residual + relu."""
    x = x_ref[...]                                   # (Np, HWp, C) bf16
    y = jnp.max(x, axis=1)                           # AdaptiveMaxPool2d(1) -> (Np, C)
    h = jnp.dot(y.astype(jnp.bfloat16), w1_ref[...],
                preferred_element_type=jnp.float32) + b1_ref[...]
    h = jnp.maximum(h, 0.0)
    s = jnp.dot(h.astype(jnp.bfloat16), w2_ref[...],
                preferred_element_type=jnp.float32) + b2_ref[...]
    s = jax.nn.sigmoid(s)
    out = jnp.maximum(x.astype(jnp.float32) * s[:, None, :]
                      + r_ref[...].astype(jnp.float32), 0.0)
    o_ref[...] = out.astype(o_ref.dtype)


def _head_kernel(x_ref, w1, b1, w2, b2, w3, b3, w4, b4, o_ref):
    """Fused 4-layer linear head (no intermediate activations) + final sigmoid."""
    h = x_ref[...]
    h = jnp.dot(h.astype(jnp.bfloat16), w1[...], preferred_element_type=jnp.float32) + b1[...]
    h = jnp.dot(h.astype(jnp.bfloat16), w2[...], preferred_element_type=jnp.float32) + b2[...]
    h = jnp.dot(h.astype(jnp.bfloat16), w3[...], preferred_element_type=jnp.float32) + b3[...]
    h = jnp.dot(h.astype(jnp.bfloat16), w4[...], preferred_element_type=jnp.float32) + b4[...]
    o_ref[...] = jax.nn.sigmoid(h)


def _pool_kernel(x_ref, o_ref):
    x = x_ref[...]
    num = jnp.sum(x * x, axis=1)
    den = jnp.sum(x, axis=1)
    # clamp the denominator so zero-padded channel columns never produce 0/0 NaNs
    # (valid because inputs are sigmoid outputs >= 0)
    o_ref[...] = num / jnp.maximum(den, 1e-12)


# ----------------------------------------------------------------------------- wrappers
def _im2col_nhwc(x, kh, kw, stride, pad, kp):
    # TODO(synk): folding the kh*kw taps into the conv kernel (accumulating shifted slices in
    # VMEM) would remove the 9x/49x HBM inflation entirely; here it is at least built once,
    # already in bf16 and with the K padding folded into the single concat write.
    N, H, W, C = x.shape
    if pad > 0:
        x = jnp.pad(x, ((0, 0), (pad, pad), (pad, pad), (0, 0)))
    Ho = (H + 2 * pad - kh) // stride + 1
    Wo = (W + 2 * pad - kw) // stride + 1
    cols = []
    for i in range(kh):
        for j in range(kw):
            cols.append(x[:, i:i + stride * (Ho - 1) + 1:stride,
                          j:j + stride * (Wo - 1) + 1:stride, :])
    K = kh * kw * C
    if kp > K:
        cols.append(jnp.zeros((N, Ho, Wo, kp - K), x.dtype))
    patches = jnp.concatenate(cols, axis=-1)          # (N, Ho, Wo, Kp), tap-major + K pad
    return patches.reshape(N * Ho * Wo, kp), Ho, Wo


@partial(jax.jit, static_argnames=("kh", "kw", "stride", "pad", "act", "cout", "kp"))
def conv_bn_act_nhwc(x, w_mat, scale, shift, residual=None, *,
                     kh, kw, stride, pad, act, cout, kp):
    """x: (N, H, W, C) NHWC; w_mat: (Kp, Np) bf16 (block-diag for grouped convs). Output bf16."""
    x = x.astype(jnp.bfloat16)
    N, H, W, C = x.shape
    if kh == 1 and kw == 1:
        if stride > 1:
            x = x[:, ::stride, ::stride, :]
        _, Ho, Wo, _ = x.shape
        a = x.reshape(N * Ho * Wo, C)
    else:
        a, Ho, Wo = _im2col_nhwc(x, kh, kw, stride, pad, kp)
    res = None
    if residual is not None:
        res = residual.reshape(N * Ho * Wo, cout)
    out = matmul_bn_act(a, w_mat, scale, shift, act=act, residual=res)
    return out[:N * Ho * Wo, :cout].reshape(N, Ho, Wo, cout)


@jax.jit
def se_resadd_relu(x, residual, w1, b1, w2, b2):
    N, H, W, C = x.shape
    HW = H * W
    Np, HWp = _round_up(N, 8), _round_up(HW, 8)
    xr = x.reshape(N, HW, C)
    rr = residual.reshape(N, HW, C)
    if HWp != HW:
        # padded rows get a large negative value so they never win the channel max; after
        # x*sigmoid + 0-residual + ReLU they become 0 and are sliced away.
        xr = jnp.pad(xr, ((0, 0), (0, HWp - HW), (0, 0)), constant_values=-1e30)
        rr = jnp.pad(rr, ((0, 0), (0, HWp - HW), (0, 0)))
    if Np != N:
        xr = jnp.pad(xr, ((0, Np - N), (0, 0), (0, 0)))
        rr = jnp.pad(rr, ((0, Np - N), (0, 0), (0, 0)))
    out = pl.pallas_call(
        _se_kernel,
        out_shape=jax.ShapeDtypeStruct((Np, HWp, C), jnp.bfloat16),
        compiler_params=pltpu.CompilerParams(vmem_limit_bytes=_MISC_VMEM_LIMIT),
    )(xr, rr, w1, b1, w2, b2)
    return out[:N, :HW, :].reshape(N, H, W, C)


@partial(jax.jit, static_argnames=("num_class",))
def head_forward(y, w1, b1, w2, b2, w3, b3, w4, b4, *, num_class):
    M, K = y.shape
    TM = min(256, _round_up(M, 16))
    Mp = _round_up(M, TM)
    if Mp != M:
        y = jnp.pad(y, ((0, Mp - M), (0, 0)))
    Np = w4.shape[1]

    def full_spec(arr):
        return pl.BlockSpec(arr.shape, lambda i: (0, 0))   # weights resident across M tiles

    weights = (w1, b1, w2, b2, w3, b3, w4, b4)
    out = pl.pallas_call(
        _head_kernel,
        out_shape=jax.ShapeDtypeStruct((Mp, Np), jnp.float32),
        grid=(Mp // TM,),
        in_specs=[pl.BlockSpec((TM, K), lambda i: (i, 0))] + [full_spec(a) for a in weights],
        out_specs=pl.BlockSpec((TM, Np), lambda i: (i, 0)),
        compiler_params=pltpu.CompilerParams(
            dimension_semantics=("parallel",),
            vmem_limit_bytes=_MISC_VMEM_LIMIT),
    )(y, *weights)
    return out[:M, :num_class]


@jax.jit
def linear_softmax_pooling(x):
    """(x**2).sum(dim=1) / x.sum(dim=1) over the time axis of (B, T, C)."""
    B, T, C = x.shape
    Tp, Cp = _round_up(T, 8), _round_up(C, 128)
    xp = jnp.pad(x.astype(jnp.float32), ((0, 0), (0, Tp - T), (0, Cp - C)))
    out = pl.pallas_call(
        _pool_kernel,
        out_shape=jax.ShapeDtypeStruct((B, Cp), jnp.float32),
        compiler_params=pltpu.CompilerParams(vmem_limit_bytes=_MISC_VMEM_LIMIT),
    )(xp)
    return out[:, :C]


@jax.jit
def gru_layer(x_tbi, w_ih, ih_scale, ih_shift, w_hh, b_hh):
    """x_tbi: (T, Bp, In) time-major -> (T, Bp, 2H) time-major; no HBM layout shuffles."""
    T, Bp, In = x_tbi.shape
    H = w_hh.shape[1]
    gx = matmul_bn_act(x_tbi.reshape(T * Bp, In), w_ih, ih_scale, ih_shift,
                       act=None, out_dtype=jnp.float32)
    gx = gx[:T * Bp, :6 * H].reshape(T, Bp, 6 * H)
    return _gru_bidir_scan(gx, w_hh, b_hh)


@jax.jit
def maxpool_3x3_s2_p1_nhwc(x):
    # TODO(synk): thin spatial reduction left in plain JAX (lax.reduce_window); could be folded
    # into the stem-conv epilogue.
    return jax.lax.reduce_window(
        x, jnp.asarray(-jnp.inf, x.dtype), jax.lax.max,
        window_dimensions=(1, 3, 3, 1),
        window_strides=(1, 2, 2, 1),
        padding=((0, 0), (1, 1), (1, 1), (0, 0)))


# ----------------------------------------------------------------------------- parameter init (torch layouts)
class _ParamGen:
    def __init__(self, seed):
        self.key = jax.random.PRNGKey(seed)

    def normal(self, shape, scale=1.0):
        self.key, sub = jax.random.split(self.key)
        return scale * jax.random.normal(sub, shape, jnp.float32)


PG = _ParamGen(1234)


def init_conv(cout, cin_per_group, kh, kw):
    fan_in = cin_per_group * kh * kw
    return PG.normal((cout, cin_per_group, kh, kw), 1.0 / math.sqrt(fan_in))


def init_bn(c):
    return dict(
        gamma=1.0 + 0.1 * PG.normal((c,)),
        beta=0.1 * PG.normal((c,)),
        mean=0.1 * PG.normal((c,)),
        var=1.0 + 0.1 * jnp.abs(PG.normal((c,))),
    )


def init_linear(out_f, in_f):
    return dict(w=PG.normal((out_f, in_f), 1.0 / math.sqrt(in_f)),
                b=0.05 * PG.normal((out_f,)))


def init_bottleneck(in_ch, ch, stride, groups, has_down, reduction):
    p = dict(stride=stride, groups=groups, has_down=has_down, has_se=reduction is not None)
    p['conv1_w'] = init_conv(ch, in_ch, 1, 1)
    p['bn1'] = init_bn(ch)
    p['conv2_w'] = init_conv(ch, ch // groups, 3, 3)
    p['bn2'] = init_bn(ch)
    p['conv3_w'] = init_conv(ch * 4, ch, 1, 1)
    p['bn3'] = init_bn(ch * 4)
    if reduction is not None:
        hid = (ch * 4) // reduction
        p['se'] = dict(fc1=init_linear(hid, ch * 4), fc2=init_linear(ch * 4, hid))
    if has_down:
        p['down_w'] = init_conv(ch * 4, in_ch, 1, 1)
        p['down_bn'] = init_bn(ch * 4)
    return p


def init_seresnext(channels=32, groups=16, reduction=8, layers=(3, 24, 36, 3)):
    p = dict(conv1_w=init_conv(channels, 1, 7, 7), bn1=init_bn(channels))
    cur = channels
    stages = []
    for ch, n, stride in zip((channels, channels * 2, channels * 4, channels * 8),
                             layers, (1, 2, 2, 2)):
        need_down = (stride != 1) or (cur != ch * 4)
        blocks = [init_bottleneck(cur, ch, stride, groups, need_down,
                                  reduction if need_down else None)]
        cur = ch * 4
        for _ in range(1, n):
            blocks.append(init_bottleneck(cur, ch, 1, groups, False, None))
        stages.append(blocks)
    p['stages'] = stages
    p['out_channels'] = cur
    return p


def init_gru(input_size, hidden, num_layers):
    layers = []
    for l in range(num_layers):
        in_sz = input_size if l == 0 else 2 * hidden
        layer = {}
        for d in ('fwd', 'bwd'):
            layer[d] = dict(
                w_ih=PG.normal((3 * hidden, in_sz), 1.0 / math.sqrt(in_sz)),
                w_hh=PG.normal((3 * hidden, hidden), 1.0 / math.sqrt(hidden)),
                b_ih=0.05 * PG.normal((3 * hidden,)),
                b_hh=0.05 * PG.normal((3 * hidden,)),
            )
        layers.append(layer)
    return layers


def init_resrnn(num_freq, num_class):
    p = {}
    p['freq_bn'] = init_bn(num_freq)
    p['resnet'] = init_seresnext(channels=32, groups=16, reduction=8, layers=(3, 24, 36, 3))
    C = p['resnet']['out_channels']   # 1024
    p['gru'] = init_gru(C, C // 2, num_layers=2)
    dims = (C, C // 2, C // 4, C // 8, num_class)
    p['linear'] = [init_linear(dims[i + 1], dims[i]) for i in range(4)]
    return p


# ----------------------------------------------------------------------------- prep (matmul-ready plan)
def bn_affine(bn, eps=1e-5):
    scale = bn['gamma'] / jnp.sqrt(bn['var'] + eps)
    shift = bn['beta'] - bn['mean'] * scale
    return scale.astype(jnp.float32), shift.astype(jnp.float32)


def prep_conv(w, bn, groups, pad):
    """Pack a (possibly grouped) conv weight into a dense (kh*kw*Cin, Cout) bf16 matrix whose
    rows are tap-major (matching the NHWC im2col patch layout); grouped convs become a
    block-diagonal matrix so each conv is one channel-dense MXU matmul."""
    Cout, Cin_g, kh, kw = w.shape
    G = groups
    Cin = Cin_g * G
    CoutG = Cout // G
    K = kh * kw * Cin
    Kp, Np = _round_up(K, 128), _round_up(Cout, 128)
    w5 = w.reshape(G, CoutG, Cin_g, kh, kw)
    eye = jnp.eye(G, dtype=w.dtype)
    dense = jnp.einsum('gocij,gh->ijgcho', w5, eye).reshape(K, Cout)
    w_mat = jnp.pad(dense, ((0, Kp - K), (0, Np - Cout))).astype(jnp.bfloat16)
    scale, shift = bn_affine(bn)
    scale = jnp.pad(scale, (0, Np - Cout))[None, :]
    shift = jnp.pad(shift, (0, Np - Cout))[None, :]
    return dict(w=w_mat, scale=scale, shift=shift, kh=kh, kw=kw, pad=pad, cout=Cout, kp=Kp)


def prep_se(se, channels):
    hid = se['fc1']['w'].shape[0]
    hidp = _round_up(hid, 128)
    assert channels % 128 == 0
    w1 = jnp.pad(jnp.transpose(se['fc1']['w']), ((0, 0), (0, hidp - hid))).astype(jnp.bfloat16)
    b1 = jnp.pad(se['fc1']['b'], (0, hidp - hid))[None, :].astype(jnp.float32)
    w2 = jnp.pad(jnp.transpose(se['fc2']['w']), ((0, hidp - hid), (0, 0))).astype(jnp.bfloat16)
    b2 = se['fc2']['b'][None, :].astype(jnp.float32)
    return dict(w1=w1, b1=b1, w2=w2, b2=b2)


def prep_gru_layer(layer):
    f, b = layer['fwd'], layer['bwd']
    H = f['w_hh'].shape[1]
    In = f['w_ih'].shape[1]
    Inp = _round_up(In, 128)
    w_ih = jnp.concatenate([jnp.transpose(f['w_ih']), jnp.transpose(b['w_ih'])], axis=1)  # (In, 6H)
    w_ih = jnp.pad(w_ih, ((0, Inp - In), (0, 0))).astype(jnp.bfloat16)
    b_ih = jnp.concatenate([f['b_ih'], b['b_ih']])[None, :].astype(jnp.float32)
    w_hh = jnp.stack([jnp.transpose(f['w_hh']), jnp.transpose(b['w_hh'])], axis=0)        # (2, H, 3H)
    b_hh = jnp.stack([f['b_hh'][None, :], b['b_hh'][None, :]], axis=0).astype(jnp.float32)
    return dict(
        w_ih=w_ih,
        ih_scale=jnp.ones((1, 6 * H), jnp.float32),
        ih_shift=b_ih,
        w_hh=w_hh.astype(jnp.bfloat16),
        b_hh=b_hh,
    )


def prep_head(linears):
    hp = {}
    for i, lp in enumerate(linears):
        out_f, in_f = lp['w'].shape
        op, ip = _round_up(out_f, 128), _round_up(in_f, 128)
        hp[f'w{i + 1}'] = jnp.pad(jnp.transpose(lp['w']),
                                  ((0, ip - in_f), (0, op - out_f))).astype(jnp.bfloat16)
        hp[f'b{i + 1}'] = jnp.pad(lp['b'], (0, op - out_f))[None, :].astype(jnp.float32)
    return hp


def prepare_resrnn(params):
    plan = {}
    plan['freq_scale'], plan['freq_shift'] = bn_affine(params['freq_bn'])
    rn = params['resnet']
    stages = []
    for stage in rn['stages']:
        blocks = []
        for blk in stage:
            bp = dict(stride=blk['stride'], has_down=blk['has_down'], has_se=blk['has_se'])
            bp['conv1'] = prep_conv(blk['conv1_w'], blk['bn1'], 1, 0)
            bp['conv2'] = prep_conv(blk['conv2_w'], blk['bn2'], blk['groups'], 1)
            bp['conv3'] = prep_conv(blk['conv3_w'], blk['bn3'], 1, 0)
            if blk['has_se']:
                bp['se'] = prep_se(blk['se'], blk['conv3_w'].shape[0])
            if blk['has_down']:
                bp['down'] = prep_conv(blk['down_w'], blk['down_bn'], 1, 0)
            blocks.append(bp)
        stages.append(blocks)
    plan['resnet'] = dict(stem=prep_conv(rn['conv1_w'], rn['bn1'], 1, 3), stages=stages)
    plan['gru'] = [prep_gru_layer(l) for l in params['gru']]
    plan['head'] = prep_head(params['linear'])
    plan['num_class'] = int(params['linear'][-1]['w'].shape[0])
    return plan


# ----------------------------------------------------------------------------- forward pass
def _run_conv(cp, x, *, stride, act, residual=None):
    return conv_bn_act_nhwc(x, cp['w'], cp['scale'], cp['shift'], residual,
                            kh=cp['kh'], kw=cp['kw'], stride=stride,
                            pad=cp['pad'], act=act, cout=cp['cout'], kp=cp['kp'])


def bottleneck_forward(bp, x):
    # TODO(synk): whole-bottleneck fusion (all three convs in one pallas_call with VMEM-resident
    # intermediates) deferred; it needs in-kernel halo slicing for the grouped 3x3.
    out = _run_conv(bp['conv1'], x, stride=1, act='relu')
    out = _run_conv(bp['conv2'], out, stride=bp['stride'], act='relu')
    if bp['has_down']:
        residual = _run_conv(bp['down'], x, stride=bp['stride'], act=None)
    else:
        residual = x
    if bp['has_se']:
        out = _run_conv(bp['conv3'], out, stride=1, act=None)
        se = bp['se']
        out = se_resadd_relu(out, residual, se['w1'], se['b1'], se['w2'], se['b2'])
    else:
        # residual add + final ReLU fused into the conv3 matmul epilogue (bf16 in/out)
        out = _run_conv(bp['conv3'], out, stride=1, act='relu', residual=residual)
    return out


def seresnext_forward(rp, x):
    h = _run_conv(rp['stem'], x, stride=2, act='relu')
    h = maxpool_3x3_s2_p1_nhwc(h)
    for stage in rp['stages']:
        for blk in stage:
            h = bottleneck_forward(blk, h)
    return h


def resrnn_forward(plan, x):
    # x: (batch, time, freq)
    B = x.shape[0]
    # eval-mode BatchNorm1d over freq (torch applies it on x.transpose(1, 2))
    h = x * plan['freq_scale'][None, None, :] + plan['freq_shift'][None, None, :]
    h = h[:, :, :, None]                                 # NHWC: (B, H=time, W=freq, C=1)
    h = seresnext_forward(plan['resnet'], h)             # (B, T/32, F/32, 1024) bf16
    # TODO(synk): freq-mean left as a thin JAX reduction.
    h = jnp.mean(h.astype(jnp.float32), axis=2)          # mean over freq -> (B, T', 1024)
    # torch's .squeeze(-1) is a no-op here because T//32 > 1

    # Go time-major and pad batch once; the GRU layers and the head then run with no further
    # HBM layout shuffles (both directions live in the lane axis).
    h = jnp.transpose(h, (1, 0, 2))                      # (T', B, 1024)
    Bp = _round_up(B, 8)
    if Bp != B:
        h = jnp.pad(h, ((0, 0), (0, Bp - B), (0, 0)))

    out = h
    for layer in plan['gru']:                            # 2-layer bidirectional GRU
        out = gru_layer(out, layer['w_ih'], layer['ih_scale'], layer['ih_shift'],
                        layer['w_hh'], layer['b_hh'])    # (T', Bp, 2H)

    Tt = out.shape[0]
    hd = plan['head']
    y = head_forward(out.reshape(Tt * Bp, out.shape[2]),
                     hd['w1'], hd['b1'], hd['w2'], hd['b2'],
                     hd['w3'], hd['b3'], hd['w4'], hd['b4'],
                     num_class=plan['num_class'])
    y = y.reshape(Tt, Bp, plan['num_class'])[:, :B, :]
    y = jnp.transpose(y, (1, 0, 2))                      # (B, T', num_class)

    # nn.Upsample(size=501, mode='nearest') along time
    # TODO(synk): nearest-neighbour upsample left as a JAX gather.
    idx = (jnp.arange(501) * Tt) // 501
    time_prob = y[:, idx, :]                             # (B, 501, num_class)
    clip_prob = linear_softmax_pooling(time_prob)        # (B, num_class)
    return {'clip_prob': clip_prob, 'time_prob': time_prob}


# ----------------------------------------------------------------------------- main
if __name__ == "__main__":
    num_freq, num_class = 64, 10
    batch, time_steps = 2, 64                            # time must be a multiple of 32 (>32)

    params = init_resrnn(num_freq, num_class)
    plan = prepare_resrnn(params)
    x = jax.random.normal(jax.random.PRNGKey(0), (batch, time_steps, num_freq), jnp.float32)

    out = resrnn_forward(plan, x)
    clip_prob = jax.block_until_ready(out['clip_prob'])
    time_prob = jax.block_until_ready(out['time_prob'])

    assert clip_prob.shape == (batch, num_class)
    assert time_prob.shape == (batch, 501, num_class)
    assert bool(jnp.all(jnp.isfinite(clip_prob))) and bool(jnp.all(jnp.isfinite(time_prob)))
    print("KERNEL_OK")
</pallas_src>

<mosaic_0001>
module attributes {stable_mosaic.version = 11 : i64} {
  func.func @_mm_kernel(%arg0: i32, %arg1: i32, %arg2: memref<256x128xbf16, #tpu.memory_space<vmem>>, %arg3: memref<128x128xbf16, #tpu.memory_space<vmem>>, %arg4: memref<1x128xf32, #tpu.memory_space<vmem>>, %arg5: memref<1x128xf32, #tpu.memory_space<vmem>>, %arg6: memref<256x128xbf16, #tpu.memory_space<vmem>>) attributes {dimension_semantics = [#tpu.dimension_semantics<parallel>, #tpu.dimension_semantics<parallel>], iteration_bounds = array<i64: 8, 1>, scalar_prefetch = 0 : i64, scratch_operands = 0 : i64, tpu.core_type = #tpu.core_type<tc>, window_params = [{transform_indices = @transform_0, window_bounds = array<i64: 256, 128>}, {transform_indices = @transform_1, window_bounds = array<i64: 128, 128>}, {transform_indices = @transform_2, window_bounds = array<i64: 1, 128>}, {transform_indices = @transform_3, window_bounds = array<i64: 1, 128>}, {transform_indices = @transform_4, window_bounds = array<i64: 256, 128>}]} {
    %c0 = arith.constant 0 : index
    %c0_0 = arith.constant 0 : index
    %0 = vector.load %arg2[%c0, %c0_0] : memref<256x128xbf16, #tpu.memory_space<vmem>>, vector<256x128xbf16>
    %c0_1 = arith.constant 0 : index
    %c0_2 = arith.constant 0 : index
    %1 = vector.load %arg3[%c0_1, %c0_2] : memref<128x128xbf16, #tpu.memory_space<vmem>>, vector<128x128xbf16>
    %cst = arith.constant dense<0.000000e+00> : vector<256x128xf32>
    %2 = tpu.matmul %0, %1, %cst {dimension_numbers = #tpu.dot_dimension_numbers<[1], [0], [0], [1], [0, 0, 1, 1], [], []>} : vector<256x128xbf16>, vector<128x128xbf16>, vector<256x128xf32> -> vector<256x128xf32>
    %c0_3 = arith.constant 0 : index
    %c0_4 = arith.constant 0 : index
    %3 = vector.load %arg4[%c0_3, %c0_4] : memref<1x128xf32, #tpu.memory_space<vmem>>, vector<1x128xf32>
    %4 = vector.broadcast %3 : vector<1x128xf32> to vector<256x128xf32>
    %5 = arith.mulf %2, %4 : vector<256x128xf32>
    %c0_5 = arith.constant 0 : index
    %c0_6 = arith.constant 0 : index
    %6 = vector.load %arg5[%c0_5, %c0_6] : memref<1x128xf32, #tpu.memory_space<vmem>>, vector<1x128xf32>
    %7 = vector.broadcast %6 : vector<1x128xf32> to vector<256x128xf32>
    %8 = arith.addf %5, %7 : vector<256x128xf32>
    %cst_7 = arith.constant 0.000000e+00 : f32
    %9 = vector.broadcast %cst_7 : f32 to vector<256x128xf32>
    %10 = arith.maximumf %8, %9 : vector<256x128xf32>
    %11 = arith.truncf %10 : vector<256x128xf32> to vector<256x128xbf16>
    %c0_8 = arith.constant 0 : index
    %c0_9 = arith.constant 0 : index
    %12 = vector.load %arg6[%c0_8, %c0_9] : memref<256x128xbf16, #tpu.memory_space<vmem>>, vector<256x128xbf16>
    tpu.vector_store %arg6[%c0_8, %c0_9], %11 {strides = array<i32>} : memref<256x128xbf16, #tpu.memory_space<vmem>>, vector<256x128xbf16>,
    return
  }
  func.func @transform_0(%arg0: i32, %arg1: i32) -> (i32, i32) {
    %c0_i32 = arith.constant 0 : i32
    %c0_i32_0 = arith.constant 0 : i32
    return %arg0, %c0_i32 : i32, i32
  }
  func.func @transform_1(%arg0: i32, %arg1: i32) -> (i32, i32) {
    %c0_i32 = arith.constant 0 : i32
    %c0_i32_0 = arith.constant 0 : i32
    return %c0_i32, %arg1 : i32, i32
  }
  func.func @transform_2(%arg0: i32, %arg1: i32) -> (i32, i32) {
    %c0_i32 = arith.constant 0 : i32
    %c0_i32_0 = arith.constant 0 : i32
    return %c0_i32, %arg1 : i32, i32
  }
  func.func @transform_3(%arg0: i32, %arg1: i32) -> (i32, i32) {
    %c0_i32 = arith.constant 0 : i32
    %c0_i32_0 = arith.constant 0 : i32
    return %c0_i32, %arg1 : i32, i32
  }
  func.func @transform_4(%arg0: i32, %arg1: i32) -> (i32, i32) {
    %c0_i32 = arith.constant 0 : i32
    return %arg0, %arg1 : i32, i32
  }
}

</mosaic_0001>

<bundles_post_ra>
// kernel: conv_bn_act_nhwc.1
= control target key start
LH: loop header
LB: loop body
LE: loop exit
PB: predicated region body
PF: predicated region fallthrough
CT: control target
= control target key end

     0   :  { %9 = vsyncpa [#allocation3], 0  ;;  %s1492_s0 = inlined_call_operand.vmem [shape: bf16[2048,128], index: 0, kind: input, shape index: {}]   ;;  %s1493_s1 = inlined_call_operand.vmem [shape: bf16[128,128], index: 1, kind: input, shape index: {}]   ;;  %s1494_s2 = inlined_call_operand.vmem [shape: f32[1,128], index: 2, kind: input, shape index: {}]   ;;  %s1495_s3 = inlined_call_operand.vmem [shape: f32[1,128], index: 3, kind: input, shape index: {}]   ;;  %s1496_s4 = inlined_call_operand.hbm [shape: bf16[2048,128], index: 4, kind: output, shape index: {}]  }
   0x1   :  { %11 = vsyncpa [#allocation3 + $0x1], 0  ;;  %s1257_s15 = smov 0   ;;  %s1259_s16 = smov 0  }
   0x2   :  { %s1261_s17 = smov 0   ;;  %s1263_s18 = smov 0  }
   0x3   :  { %s1265_s19 = smov 0   ;;  %s1267_s20 = smov 0  }
   0x4 LB: > { %s835_s21 = sadd.s32 4294967295, %s1228_s20   ;;  %s836_s22 = sadd.s32 4294967294, %s1228_s20   ;;  %s1228_s20 = sphi %s1267_s20, %s17_s20   ;;  %s1224_s19 = sphi %s1265_s19, %s1503_s19   ;;  %s1220_s18 = sphi %s1263_s18, %s1502_s18   ;;  %s1216_s17 = sphi %s1261_s17, %s1501_s17   ;;  %s1212_s16 = sphi %s1259_s16, %s1500_s16   ;;  %s1208_s15 = sphi %s1257_s15, %s1499_s15  }
   0x5   : > { %s29_s23 = sadd.s32 1, %s1224_s19  ;;  %s142_s24 = sadd.s32 1, %s1216_s17 }
   0x6   : > { %p31_p0 = scmp.ge.s32.totalorder %s29_s23, 8  ;;  %p152_p1 = scmp.ne.s32.totalorder %s1216_s17, %s1212_s16 }
   0x7   : > { %p153_p2 = scmp.eq.s32.totalorder %s835_s21, 7  ;;  %p158_p3 = scmp.ne.s32.totalorder %s1212_s16, %s1208_s15 }
   0x8   : > { %s1505_s23 = smov (%p31_p0, %s29_s23), 0  ;;  %p159_p5 = scmp.eq.s32.totalorder %s836_s22, 7 }
   0x9   : > { %p1297_p4 = por %p153_p2, %p152_p1  ;;  %s137_s26 = ssub.s32 %s1224_s19, %s1505_s23 }
   0xa   : > { %p842_p6 = scmp.ge.s32.totalorder %s1228_s20, 1  ;;  %p140_p7 = scmp.eq.s32.totalorder %s137_s26, 0 }
   0xb   : > { %p1304_p8 = por %p159_p5, %p158_p3  ;;  %p205_p9 = scmp.lt.s32.totalorder %s1228_s20, 9 }
   0xc   : > { %s1310_s28 = scalar_select %p140_p7, %s1216_s17, %s142_s24  }
   0xd   : > { %p206_p10 = pnand %p842_p6, %p205_p9 }
   0xe   : > { %s844_s11 = sshll.u32 (!%p206_p10), %s1220_s18, 5  ;;  %s238_s12 = sand.u32 (!%p206_p10), 1, %s1212_s16  }
   0xf   : > { %209 = sbr.rel (%p206_p10) target bundleno = 254 (0xfe), region = 36  ;;  %p242_p11 = scmp.lt.s32.totalorder (!%p206_p10), %s844_s11, 255 }
  0x10   : > { %s843_s13 = sshll.u32 (!%p206_p10), %s238_s12, 7  ;;  %s971_s21 = sshll.u32 (!%p206_p10), %s1220_s18, 7 }
  0x11   : > { %s1385_s14 = scalar_lea.vmem (!%p206_p10), [#allocation2], %s843_s13  ;;  %s708_s30 = scalar_lea.sflag (!%p206_p10), [#allocation3], %s238_s12 }
  0x12   : > { %s721_s18 = sshll.u32 (!%p206_p10), %s1385_s14, 4  ;;  %s1170_s9 = scalar_lea.hbm (!%p206_p10), %s1496_s4, 1024  ;;  %s722_s18 = int_to_ptr.vmem [resolvable:$true] %s721_s18 }
  0x14   : > { %v970_v0 = vld [vmem:[%s1493_s1 + $0x38] sm:$0xff]  ;;  %v969_v1 = vld [vmem:[%s1493_s1 + $0x30] sm:$0xff]  ;;  %v968_v2 = vld [vmem:[%s1493_s1 + $0x28] sm:$0xff]  ;;  %s1507_s11 = smov (!%p242_p11, %s844_s11), 255 }
  0x15   : > { %450 = vmatpush.bf16.msra.mxu0 %v970_v0  ;;  %1067 = vmatpush.bf16.msra.mxu1 %v970_v0  ;;  %v967_v3 = vld [vmem:[%s1493_s1 + $0x20] sm:$0xff]  ;;  %v966_v4 = vld [vmem:[%s1493_s1 + $0x18] sm:$0xff]  ;;  %v965_v5 = vld [vmem:[%s1493_s1 + $0x10] sm:$0xff]  ;;  %s845_s26 = sshll.u32 %s1507_s11, 2 }
  0x16   : > { %1068 = vmatpush.bf16.msra.mxu2 %v970_v0  ;;  %1069 = vmatpush.bf16.msra.mxu3 %v970_v0  ;;  %v964_v6 = vld [vmem:[%s1493_s1 + $0x8] sm:$0xff]  ;;  %v963_v7 = vld [vmem:[%s1493_s1] sm:$0xff]  ;;  %s1340_s7 = scalar_lea.vmem %s1492_s0, %s845_s26  ;;  %s720_s26 = scalar_lea.hbm %s1496_s4, %s971_s21 }
  0x17   : > { %v947_v8 = vld [vmem:[%s1340_s7] sm:$0xff]  ;;  %v948_v12 = vld [vmem:[%s1340_s7 + $0x8] sm:$0xff]  ;;  %v949_v16 = vld [vmem:[%s1340_s7 + $0x10] sm:$0xff]  ;;  %s723_s29 = sshll.u32 %s720_s26, 4  ;;  %s724_s29 = int_to_ptr.hbm [resolvable:$true] %s723_s29 }
  0x18   : > { %v951_v9 = vld [vmem:[%s1340_s7 + $0x20] sm:$0xff]  ;;  %v952_v13 = vld [vmem:[%s1340_s7 + $0x28] sm:$0xff]  ;;  %v953_v17 = vld [vmem:[%s1340_s7 + $0x30] sm:$0xff]  ;;  %s1164_s5 = sshra.s32 %s724_s29, 4  ;;  %s1165_s5 = int_to_ptr.hbm [resolvable:$true] %s1164_s5 }
  0x19   : > { %451 = vmatpush.bf16.msra.mxu0 %v969_v1  ;;  %1070 = vmatpush.bf16.msra.mxu1 %v969_v1  ;;  %v955_v10 = vld [vmem:[%s1340_s7 + $0x40] sm:$0xff]  ;;  %v956_v14 = vld [vmem:[%s1340_s7 + $0x48] sm:$0xff]  ;;  %v957_v18 = vld [vmem:[%s1340_s7 + $0x50] sm:$0xff]  ;;  %s1166_s6 = scalar_lea.hbm %s1165_s5, 128  ;;  %p1171_p1 = scmp.lt.s32.totalorder %s1165_s5, %s1496_s4 }
  0x1a   : > { %1071 = vmatpush.bf16.msra.mxu2 %v969_v1  ;;  %1072 = vmatpush.bf16.msra.mxu3 %v969_v1  ;;  %v959_v11 = vld [vmem:[%s1340_s7 + $0x60] sm:$0xff]  ;;  %v960_v15 = vld [vmem:[%s1340_s7 + $0x68] sm:$0xff]  ;;  %v961_v19 = vld [vmem:[%s1340_s7 + $0x70] sm:$0xff]  ;;  %p1167_p12 = scmp.ne.s32.totalorder %s1165_s5, %s1166_s6  ;;  %p1172_p2 = scmp.lt.s32.totalorder %s1170_s9, %s1166_s6 }
  0x1b   : > { %v950_v20 = vld [vmem:[%s1340_s7 + $0x18] sm:$0xff]  ;;  %v1361_v26 = vld [vmem:[%s1494_s2] ss:$0 sm:$0xff] }
  0x1c   : > { %v954_v21 = vld [vmem:[%s1340_s7 + $0x38] sm:$0xff]  ;;  %v1367_v28 = vld [vmem:[%s1495_s3] ss:$0 sm:$0xff]  ;;  %p1168_p13 = pnand %p1167_p12, %p1297_p4  ;;  %p1173_p3 = por %p1172_p2, %p1171_p1 }
  0x1d   : > { %452 = vmatpush.bf16.msra.mxu0 %v968_v2  ;;  %1073 = vmatpush.bf16.msra.mxu1 %v968_v2  ;;  %v958_v22 = vld [vmem:[%s1340_s7 + $0x58] sm:$0xff] }
  0x1e   : > { %1074 = vmatpush.bf16.msra.mxu2 %v968_v2  ;;  %1075 = vmatpush.bf16.msra.mxu3 %v968_v2  ;;  %v962_v23 = vld [vmem:[%s1340_s7 + $0x78] sm:$0xff]  ;;  %p1169_p0 = pneg %p1168_p13 }
  0x20   : > { %p1174_p5 = pnand %p1173_p3, %p1169_p0 }
  0x21   : > { %453 = vmatpush.bf16.msra.mxu0 %v967_v3  ;;  %1076 = vmatpush.bf16.msra.mxu1 %v967_v3 }
  0x22   : > { %1077 = vmatpush.bf16.msra.mxu2 %v967_v3  ;;  %1078 = vmatpush.bf16.msra.mxu3 %v967_v3 }
  0x25   : > { %454 = vmatpush.bf16.msra.mxu0 %v966_v4  ;;  %1079 = vmatpush.bf16.msra.mxu1 %v966_v4 }
  0x26   : > { %1080 = vmatpush.bf16.msra.mxu2 %v966_v4  ;;  %1081 = vmatpush.bf16.msra.mxu3 %v966_v4 }
  0x29   : > { %455 = vmatpush.bf16.msra.mxu0 %v965_v5  ;;  %1082 = vmatpush.bf16.msra.mxu1 %v965_v5 }
  0x2a   : > { %1083 = vmatpush.bf16.msra.mxu2 %v965_v5  ;;  %1084 = vmatpush.bf16.msra.mxu3 %v965_v5 }
  0x2d   : > { %456 = vmatpush.bf16.msra.mxu0 %v964_v6  ;;  %1085 = vmatpush.bf16.msra.mxu1 %v964_v6 }
  0x2e   : > { %1086 = vmatpush.bf16.msra.mxu2 %v964_v6  ;;  %1087 = vmatpush.bf16.msra.mxu3 %v964_v6 }
  0x31   : > { %457 = vmatpush.bf16.msra.mxu0 %v963_v7  ;;  %1088 = vmatpush.bf16.msra.mxu1 %v963_v7 }
  0x32   : > { %1089 = vmatpush.bf16.msra.mxu2 %v963_v7  ;;  %1090 = vmatpush.bf16.msra.mxu3 %v963_v7 }
  0x34   : > { %458 = vmatmul.bf16.vlgmr.msra.gmra.mxu0 %v947_v8  ;;  %478 = vmatmul.bf16.vlgmr.msra.gmra.mxu1 %v951_v9 }
  0x35   : > { %498 = vmatmul.bf16.vlgmr.msra.gmra.mxu2 %v955_v10  ;;  %518 = vmatmul.bf16.vlgmr.msra.gmra.mxu3 %v959_v11 }
  0x44   : > { %463 = vmatmul.bf16.gmra.mxu0 %v948_v12  ;;  %483 = vmatmul.bf16.gmra.mxu1 %v952_v13 }
  0x45   : > { %503 = vmatmul.bf16.gmra.mxu2 %v956_v14  ;;  %523 = vmatmul.bf16.gmra.mxu3 %v960_v15 }
  0x54   : > { %468 = vmatmul.bf16.gmra.mxu0 %v949_v16  ;;  %488 = vmatmul.bf16.gmra.mxu1 %v953_v17 }
  0x55   : > { %508 = vmatmul.bf16.gmra.mxu2 %v957_v18  ;;  %528 = vmatmul.bf16.gmra.mxu3 %v961_v19 }
  0x64   : > { %473 = vmatmul.bf16.gmra.mxu0 %v950_v20  ;;  %493 = vmatmul.bf16.gmra.mxu1 %v954_v21 }
  0x65   : > { %513 = vmatmul.bf16.gmra.mxu2 %v958_v22  ;;  %533 = vmatmul.bf16.gmra.mxu3 %v962_v23 }
  0xb1   : > { %v459_v24 = vpop.f32.mrf.mxu0  ;;  %v479_v25 = vpop.f32.mrf.mxu1 }
  0xb2   : > { %v543_v27 = vmul.f32 %v1361_v26, %v459_v24  ;;  %v551_v29 = vmul.f32 %v1361_v26, %v479_v25 }
  0xb4   : > { %v579_v34 = vadd.f32 %v1367_v28, %v543_v27  ;;  %v587_v35 = vadd.f32 %v1367_v28, %v551_v29 }
  0xb6   : > { %v611_v42 = vmax.f32 %v579_v34, 0.0  ;;  %v619_v43 = vmax.f32 %v587_v35, 0.0 }
  0xb8   : > { %v499_v30 = vpop.f32.mrf.mxu2  ;;  %v519_v31 = vpop.f32.mrf.mxu3 }
  0xb9   : > { %v461_v32 = vpop.f32.mrf.mxu0  ;;  %v481_v33 = vpop.f32.mrf.mxu1  ;;  %v559_v40 = vmul.f32 %v1361_v26, %v499_v30  ;;  %v567_v41 = vmul.f32 %v1361_v26, %v519_v31 }
  0xba   : > { %v544_v36 = vmul.f32 %v1361_v26, %v461_v32  ;;  %v552_v37 = vmul.f32 %v1361_v26, %v481_v33 }
  0xbb   : > { %v595_v50 = vadd.f32 %v1367_v28, %v559_v40  ;;  %v603_v51 = vadd.f32 %v1367_v28, %v567_v41 }
  0xbc   : > { %v580_v38 = vadd.f32 %v1367_v28, %v544_v36  ;;  %v588_v39 = vadd.f32 %v1367_v28, %v552_v37 }
  0xbd   : > { %v627_v58 = vmax.f32 %v595_v50, 0.0  ;;  %v635_v59 = vmax.f32 %v603_v51, 0.0 }
  0xbe   : > { %v612_v44 = vmax.f32 %v580_v38, 0.0  ;;  %v620_v45 = vmax.f32 %v588_v39, 0.0 }
  0xc0   : > { %v975_v46 = vpack.c.bf16 %v612_v44, %v611_v42  ;;  %v995_v47 = vpack.c.bf16 %v620_v45, %v619_v43  ;;  %v501_v48 = vpop.f32.mrf.mxu2  ;;  %v521_v49 = vpop.f32.mrf.mxu3 }
  0xc1   : > { %v560_v52 = vmul.f32 %v1361_v26, %v501_v48  ;;  %v568_v53 = vmul.f32 %v1361_v26, %v521_v49  ;;  %v464_v54 = vpop.f32.mrf.mxu0  ;;  %v484_v55 = vpop.f32.mrf.mxu1 }
  0xc2   : > { %976 = vst [vmem:[%s1385_s14] sm:$0xff] %v975_v46   ;;  %v545_v62 = vmul.f32 %v1361_v26, %v464_v54  ;;  %v553_v63 = vmul.f32 %v1361_v26, %v484_v55 }
  0xc3   : > { %1055 = vst [vmem:[%s1385_s14 + $0x20] sm:$0xff] %v995_v47   ;;  %v596_v56 = vadd.f32 %v1367_v28, %v560_v52  ;;  %v604_v57 = vadd.f32 %v1367_v28, %v568_v53 }
  0xc4   : > { %v581_v6 = vadd.f32 %v1367_v28, %v545_v62  ;;  %v589_v7 = vadd.f32 %v1367_v28, %v553_v63 }
  0xc5   : > { %v628_v60 = vmax.f32 %v596_v56, 0.0  ;;  %v636_v61 = vmax.f32 %v604_v57, 0.0 }
  0xc6   : > { %v613_v14 = vmax.f32 %v581_v6, 0.0  ;;  %v621_v15 = vmax.f32 %v589_v7, 0.0 }
  0xc7   : > { %v1015_v0 = vpack.c.bf16 %v628_v60, %v627_v58  ;;  %v1035_v1 = vpack.c.bf16 %v636_v61, %v635_v59 }
  0xc8   : > { %v504_v2 = vpop.f32.mrf.mxu2  ;;  %v524_v3 = vpop.f32.mrf.mxu3 }
  0xc9   : > { %1059 = vst [vmem:[%s1385_s14 + $0x40] sm:$0xff] %v1015_v0   ;;  %v466_v4 = vpop.f32.mrf.mxu0  ;;  %v486_v5 = vpop.f32.mrf.mxu1  ;;  %v561_v12 = vmul.f32 %v1361_v26, %v504_v2  ;;  %v569_v13 = vmul.f32 %v1361_v26, %v524_v3 }
  0xca   : > { %1063 = vst [vmem:[%s1385_s14 + $0x60] sm:$0xff] %v1035_v1   ;;  %v546_v8 = vmul.f32 %v1361_v26, %v466_v4  ;;  %v554_v9 = vmul.f32 %v1361_v26, %v486_v5 }
  0xcb   : > { %v597_v22 = vadd.f32 %v1367_v28, %v561_v12  ;;  %v605_v23 = vadd.f32 %v1367_v28, %v569_v13 }
  0xcc   : > { %v582_v10 = vadd.f32 %v1367_v28, %v546_v8  ;;  %v590_v11 = vadd.f32 %v1367_v28, %v554_v9 }
  0xcd   : > { %v629_v32 = vmax.f32 %v597_v22, 0.0  ;;  %v637_v33 = vmax.f32 %v605_v23, 0.0 }
  0xce   : > { %v614_v16 = vmax.f32 %v582_v10, 0.0  ;;  %v622_v17 = vmax.f32 %v590_v11, 0.0 }
  0xd0   : > { %v980_v18 = vpack.c.bf16 %v614_v16, %v613_v14  ;;  %v1000_v19 = vpack.c.bf16 %v622_v17, %v621_v15  ;;  %v506_v20 = vpop.f32.mrf.mxu2  ;;  %v526_v21 = vpop.f32.mrf.mxu3 }
  0xd1   : > { %v562_v24 = vmul.f32 %v1361_v26, %v506_v20  ;;  %v570_v25 = vmul.f32 %v1361_v26, %v526_v21  ;;  %v469_v27 = vpop.f32.mrf.mxu0  ;;  %v489_v29 = vpop.f32.mrf.mxu1 }
  0xd2   : > { %1052 = vst [vmem:[%s1385_s14 + $0x8] sm:$0xff] %v980_v18   ;;  %v547_v36 = vmul.f32 %v1361_v26, %v469_v27  ;;  %v555_v37 = vmul.f32 %v1361_v26, %v489_v29 }
  0xd3   : > { %1056 = vst [vmem:[%s1385_s14 + $0x28] sm:$0xff] %v1000_v19   ;;  %v598_v30 = vadd.f32 %v1367_v28, %v562_v24  ;;  %v606_v31 = vadd.f32 %v1367_v28, %v570_v25 }
  0xd4   : > { %v583_v44 = vadd.f32 %v1367_v28, %v547_v36  ;;  %v591_v45 = vadd.f32 %v1367_v28, %v555_v37 }
  0xd5   : > { %v630_v34 = vmax.f32 %v598_v30, 0.0  ;;  %v638_v35 = vmax.f32 %v606_v31, 0.0 }
  0xd6   : > { %v615_v52 = vmax.f32 %v583_v44, 0.0  ;;  %v623_v53 = vmax.f32 %v591_v45, 0.0 }
  0xd7   : > { %v1020_v38 = vpack.c.bf16 %v630_v34, %v629_v32  ;;  %v1040_v39 = vpack.c.bf16 %v638_v35, %v637_v33 }
  0xd8   : > { %v509_v40 = vpop.f32.mrf.mxu2  ;;  %v529_v41 = vpop.f32.mrf.mxu3 }
  0xd9   : > { %1060 = vst [vmem:[%s1385_s14 + $0x48] sm:$0xff] %v1020_v38   ;;  %v471_v42 = vpop.f32.mrf.mxu0  ;;  %v491_v43 = vpop.f32.mrf.mxu1  ;;  %v563_v50 = vmul.f32 %v1361_v26, %v509_v40  ;;  %v571_v51 = vmul.f32 %v1361_v26, %v529_v41 }
  0xda   : > { %1064 = vst [vmem:[%s1385_s14 + $0x68] sm:$0xff] %v1040_v39   ;;  %v548_v46 = vmul.f32 %v1361_v26, %v471_v42  ;;  %v556_v47 = vmul.f32 %v1361_v26, %v491_v43 }
  0xdb   : > { %v599_v60 = vadd.f32 %v1367_v28, %v563_v50  ;;  %v607_v61 = vadd.f32 %v1367_v28, %v571_v51 }
  0xdc   : > { %v584_v48 = vadd.f32 %v1367_v28, %v548_v46  ;;  %v592_v49 = vadd.f32 %v1367_v28, %v556_v47 }
  0xdd   : > { %v631_v4 = vmax.f32 %v599_v60, 0.0  ;;  %v639_v5 = vmax.f32 %v607_v61, 0.0 }
  0xde   : > { %v616_v54 = vmax.f32 %v584_v48, 0.0  ;;  %v624_v55 = vmax.f32 %v592_v49, 0.0 }
  0xe0   : > { %v985_v56 = vpack.c.bf16 %v616_v54, %v615_v52  ;;  %v1005_v57 = vpack.c.bf16 %v624_v55, %v623_v53  ;;  %v511_v58 = vpop.f32.mrf.mxu2  ;;  %v531_v59 = vpop.f32.mrf.mxu3 }
  0xe1   : > { %v564_v62 = vmul.f32 %v1361_v26, %v511_v58  ;;  %v572_v63 = vmul.f32 %v1361_v26, %v531_v59  ;;  %v474_v0 = vpop.f32.mrf.mxu0  ;;  %v494_v1 = vpop.f32.mrf.mxu1 }
  0xe2   : > { %1053 = vst [vmem:[%s1385_s14 + $0x10] sm:$0xff] %v985_v56   ;;  %v549_v8 = vmul.f32 %v1361_v26, %v474_v0  ;;  %v557_v9 = vmul.f32 %v1361_v26, %v494_v1 }
  0xe3   : > { %1057 = vst [vmem:[%s1385_s14 + $0x30] sm:$0xff] %v1005_v57   ;;  %v600_v2 = vadd.f32 %v1367_v28, %v564_v62  ;;  %v608_v3 = vadd.f32 %v1367_v28, %v572_v63 }
  0xe4   : > { %v585_v16 = vadd.f32 %v1367_v28, %v549_v8  ;;  %v593_v17 = vadd.f32 %v1367_v28, %v557_v9 }
  0xe5   : > { %v632_v6 = vmax.f32 %v600_v2, 0.0  ;;  %v640_v7 = vmax.f32 %v608_v3, 0.0 }
  0xe6   : > { %v617_v24 = vmax.f32 %v585_v16, 0.0  ;;  %v625_v25 = vmax.f32 %v593_v17, 0.0 }
  0xe7   : > { %v1025_v10 = vpack.c.bf16 %v632_v6, %v631_v4  ;;  %v1045_v11 = vpack.c.bf16 %v640_v7, %v639_v5 }
  0xe8   : > { %v514_v12 = vpop.f32.mrf.mxu2  ;;  %v534_v13 = vpop.f32.mrf.mxu3 }
  0xe9   : > { %1061 = vst [vmem:[%s1385_s14 + $0x50] sm:$0xff] %v1025_v10   ;;  %v476_v14 = vpop.f32.mrf.mxu0  ;;  %v496_v15 = vpop.f32.mrf.mxu1  ;;  %v565_v22 = vmul.f32 %v1361_v26, %v514_v12  ;;  %v573_v23 = vmul.f32 %v1361_v26, %v534_v13 }
  0xea   : > { %1065 = vst [vmem:[%s1385_s14 + $0x70] sm:$0xff] %v1045_v11   ;;  %v550_v18 = vmul.f32 %v1361_v26, %v476_v14  ;;  %v558_v19 = vmul.f32 %v1361_v26, %v496_v15 }
  0xeb   : > { %v601_v34 = vadd.f32 %v1367_v28, %v565_v22  ;;  %v609_v35 = vadd.f32 %v1367_v28, %v573_v23 }
  0xec   : > { %v586_v20 = vadd.f32 %v1367_v28, %v550_v18  ;;  %v594_v21 = vadd.f32 %v1367_v28, %v558_v19 }
  0xed   : > { %v633_v40 = vmax.f32 %v601_v34, 0.0  ;;  %v641_v41 = vmax.f32 %v609_v35, 0.0 }
  0xee   : > { %v618_v27 = vmax.f32 %v586_v20, 0.0  ;;  %v626_v29 = vmax.f32 %v594_v21, 0.0 }
  0xf0   : > { %v990_v30 = vpack.c.bf16 %v618_v27, %v617_v24  ;;  %v1010_v31 = vpack.c.bf16 %v626_v29, %v625_v25  ;;  %v516_v32 = vpop.f32.mrf.mxu2  ;;  %v536_v33 = vpop.f32.mrf.mxu3 }
  0xf1   : > { %v566_v36 = vmul.f32 %v1361_v26, %v516_v32  ;;  %v574_v37 = vmul.f32 %v1361_v26, %v536_v33 }
  0xf2   : > { %1054 = vst [vmem:[%s1385_s14 + $0x18] sm:$0xff] %v990_v30  }
  0xf3   : > { %1058 = vst [vmem:[%s1385_s14 + $0x38] sm:$0xff] %v1010_v31   ;;  %v602_v38 = vadd.f32 %v1367_v28, %v566_v36  ;;  %v610_v39 = vadd.f32 %v1367_v28, %v574_v37 }
  0xf5   : > { %v634_v42 = vmax.f32 %v602_v38, 0.0  ;;  %v642_v26 = vmax.f32 %v610_v39, 0.0 }
  0xf7   : > { %v1030_v43 = vpack.c.bf16 %v634_v42, %v633_v40  ;;  %v1050_v44 = vpack.c.bf16 %v642_v26, %v641_v41 }
  0xf9   : > { %1062 = vst [vmem:[%s1385_s14 + $0x58] sm:$0xff] %v1030_v43  }
  0xfa   : > { %1066 = vst [vmem:[%s1385_s14 + $0x78] sm:$0xff] %v1050_v44  }
  0xfb   : > { %1177 = shalt.err (!%p1174_p5)
}
  0xfc   : > { %s1230_s12 = smov 64   ;;  %s1231_s13 = smov 4  }
  0xfd   : > { %1091 = dma.vmem_to_hbm [thread:$0]  (%p1297_p4), %s722_s18, 2048, %s724_s29, %s708_s30, %s1230_s12, %s1230_s12, %s1231_s13  }
  0xfe PF: > { %p1097_p6 = scmp.ge.s32.totalorder %s1228_s20, 2  ;;  %s738_s14 = sand.u32 1, %s1208_s15  }
  0xff   : > { %s739_s21 = scalar_lea.sflag [#allocation3], %s738_s14 }
 0x100   : > { %p1094_p7 = pnand %p1097_p6, %p1304_p8 }
 0x102   : > { %p1095_p9 = pneg %p1094_p7 }
 0x104   : > { %1203 = dma.done.wait (%p1095_p9), %s739_s21, 2048  }
 0x105   : > { %1205 = vsyncadd (%p1095_p9), %s739_s21, 4294965248  ;;  %s17_s20 = sadd.s32 1, %s1228_s20   ;;  %s1499_s15 = smov %s1212_s16 }
 0x106   : > { %p14_p10 = scmp.ge.s32.totalorder %s17_s20, 10   ;;  %s1500_s16 = smov %s1216_s17 }
 0x107   : > { %s1501_s17 = smov %s1310_s28  ;;  %s1502_s18 = smov %s1224_s19 }
 0x108   : > { %s1503_s19 = smov %s1505_s23  ;;  %16 = sbr.rel (!%p14_p10) target bundleno = 4 (0x4), region = 80 }
 0x10d   :  { %745 = vsyncpa [#allocation3], 1 }
 0x10e   :  { %747 = vsyncpa [#allocation3 + $0x1], 1 }

</bundles_post_ra>
